<compile_context>
chip_gen: v7x
topology: tpu7x:2x2x1
jax: 0.10.0
libtpu: 0.0.40
codegen_flags: <defaults>
</compile_context>

<pallas_src>
import functools

import jax
import jax.numpy as jnp
from jax.experimental import pallas as pl
from jax.experimental.pallas import tpu as pltpu


# ------------------------------- Pallas kernel -------------------------------
def _basic_block_kernel(x_ref, w1_ref, w3_ref, tap_ref, b1_ref, b3_ref, o_ref,
                        *, hw, shifts):
    """Fused BasicBlock for one batch element.

    x_ref  : (1, 2, Cs, HW)  -- [x1 | x2] halves; channels on sublanes, H*W on lanes
    w1_ref : (Cs, Cs)  conv1 weight with bn1 scale folded in
    w3_ref : (Cs, Cs)  conv3 weight with bn3 scale folded in
    tap_ref: (9, Cs, HW) depthwise taps, bn2-scaled and boundary-masked per tap
    b1_ref : (Cs, 1)   bn1 bias
    b3_ref : (Cs, 1)   bn3 bias with bn2 bias folded through conv3
    o_ref  : (1, Cs, 2*HW) -- row i holds [x1[i] | branch[i]] (== shuffled NCHW)
    """
    x1 = x_ref[0, 0]                                       # (Cs, HW) passthrough half
    x2 = x_ref[0, 1]                                       # (Cs, HW) branch input

    mm_dtype = w1_ref.dtype                                # f32, or bf16 on v6e/v7x

    # ---- conv1 (1x1) + bn1 + relu (scale pre-folded into weights) ----
    t = jnp.dot(w1_ref[...], x2.astype(mm_dtype),
                preferred_element_type=jnp.float32)        # (Cs, HW) on the MXU
    t = jnp.maximum(t + b1_ref[...], 0.0)

    # ---- depthwise 3x3 + bn2 scale ----
    # Tap (dh, dw) reads flattened position l + dh*W + dw.  Implemented as a
    # static XLU lane-roll of the whole (Cs, HW) tile times a pre-masked,
    # pre-scaled per-tap weight plane: no padded scratch, no tile-crossing
    # slices, no broadcasts inside the loop.  bn2's bias is folded into b3.
    acc = None
    for k, s in enumerate(shifts):                         # 9 static taps, unrolled
        shifted = t if s == 0 else pltpu.roll(t, s, axis=1)
        contrib = shifted * tap_ref[k]
        acc = contrib if acc is None else acc + contrib

    # ---- conv3 (1x1) + bn3 + relu (scale folded into weights, bias carries bn2) ----
    u = jnp.dot(w3_ref[...], acc.astype(mm_dtype),
                preferred_element_type=jnp.float32)        # (Cs, HW)
    u = jnp.maximum(u + b3_ref[...], 0.0)

    # ---- fused concat + channel shuffle (groups=2) ----
    # output channel 2i <- x1[i], channel 2i+1 <- branch[i]; both stores are
    # lane-dense (offsets 0 / HW are multiples of 128 for HW = 256).
    o_ref[0, :, pl.ds(0, hw)] = x1.astype(o_ref.dtype)
    o_ref[0, :, pl.ds(hw, hw)] = u.astype(o_ref.dtype)


# --------------------------------- wrapper ------------------------------------
def _fold_bn(gamma, beta, mean, var, eps=1e-5):
    scale = gamma / jnp.sqrt(var + eps)
    return scale, beta - mean * scale


def basic_block_forward(x, params, *, split_ratio=0.5, use_bf16_matmul=False):
    """BasicBlock forward.  x: (N, C, H, W) float32 (PyTorch NCHW convention)."""
    N, C, H, W = x.shape
    Cs = int(C * split_ratio)
    assert 2 * Cs == C, "fused kernel assumes an exact 50/50 channel split (as in the module)"
    HW = H * W

    # bf16 MXU operands are a win on v6e/v7x; keep f32 by default for the
    # strict check in __main__ (elementwise path is always f32, v5e friendly).
    mm_dtype = jnp.bfloat16 if use_bf16_matmul else jnp.float32

    s1, b1 = _fold_bn(*params["bn1"])
    s2, b2 = _fold_bn(*params["bn2"])
    s3, b3 = _fold_bn(*params["bn3"])

    w1 = params["w1"][:, :, 0, 0]                          # (Cout, Cin)
    w3 = params["w3"][:, :, 0, 0]
    dw = params["dw"][:, 0]                                # (Cs, 3, 3)

    # Fold BN scales into the weights (one-time constant folding).
    w1s = (s1[:, None] * w1).astype(mm_dtype)
    w3s_f32 = s3[:, None] * w3
    w3s = w3s_f32.astype(mm_dtype)
    # Fold bn2's bias through conv3+bn3 into one bias (exact, linear).  Use an
    # elementwise-sum form so the fold never depends on matmul precision.
    b3_eff = (jnp.sum(w3s_f32 * b2[None, :], axis=1) + b3)[:, None]   # (Cs, 1)
    b1c = b1[:, None]                                                 # (Cs, 1)

    # Pre-scaled, boundary-masked depthwise taps + static lane shifts for the
    # flattened spatial axis.
    hh = jnp.arange(HW, dtype=jnp.int32) // W
    ww = jnp.arange(HW, dtype=jnp.int32) % W
    taps, shifts = [], []
    for dh in (-1, 0, 1):
        for dwx in (-1, 0, 1):
            valid = ((hh + dh >= 0) & (hh + dh < H) &
                     (ww + dwx >= 0) & (ww + dwx < W)).astype(jnp.float32)
            taps.append((s2 * dw[:, dh + 1, dwx + 1])[:, None] * valid[None, :])
            shifts.append((-(dh * W + dwx)) % HW)          # roll amount for "read l + s"
    tap_arr = jnp.stack(taps, axis=0)                      # (9, Cs, HW)

    # Only layout op outside the kernel: view the channels as the two halves
    # [x1 | x2] with the spatial field flattened onto lanes (row-major reshape).
    x_r = x.reshape(N, 2, Cs, HW)

    kernel = functools.partial(_basic_block_kernel, hw=HW, shifts=tuple(shifts))

    out_flat = pl.pallas_call(
        kernel,
        out_shape=jax.ShapeDtypeStruct((N, Cs, 2 * HW), x.dtype),
        grid_spec=pltpu.PrefetchScalarGridSpec(
            num_scalar_prefetch=0,
            grid=(N,),                                     # >=2 parallel steps for v7x megacore
            in_specs=[
                pl.BlockSpec((1, 2, Cs, HW), lambda n: (n, 0, 0, 0)),   # x halves
                pl.BlockSpec((Cs, Cs), lambda n: (0, 0)),               # w1 (bn1-scaled)
                pl.BlockSpec((Cs, Cs), lambda n: (0, 0)),               # w3 (bn3-scaled)
                pl.BlockSpec((9, Cs, HW), lambda n: (0, 0, 0)),         # masked dw taps
                pl.BlockSpec((Cs, 1), lambda n: (0, 0)),                # bn1 bias
                pl.BlockSpec((Cs, 1), lambda n: (0, 0)),                # bn3 (+bn2) bias
            ],
            out_specs=pl.BlockSpec((1, Cs, 2 * HW), lambda n: (n, 0, 0)),
        ),
        compiler_params=pltpu.CompilerParams(
            dimension_semantics=("parallel",),
            vmem_limit_bytes=32 * 1024 * 1024,
        ),
    )(x_r, w1s, w3s, tap_arr, b1c, b3_eff)

    # Row i of the kernel output is [x1[i] | branch[i]], i.e. shuffled channels
    # (2i, 2i+1): a plain row-major reshape recovers the NCHW result.
    return out_flat.reshape(N, C, H, W)


# ----------------------------- pure-JAX reference -----------------------------
def _bn_ref(y, gamma, beta, mean, var, eps=1e-5):
    s = gamma / jnp.sqrt(var + eps)
    return y * s[None, :, None, None] + (beta - mean * s)[None, :, None, None]


def basic_block_ref(x, params, split_ratio=0.5, groups=2):
    N, C, H, W = x.shape
    c = int(C * split_ratio)
    x1, x2 = x[:, :c], x[:, c:]
    Cs = x2.shape[1]
    dn = ("NCHW", "OIHW", "NCHW")
    y = jax.lax.conv_general_dilated(x2, params["w1"], (1, 1), "VALID",
                                     dimension_numbers=dn)
    y = jax.nn.relu(_bn_ref(y, *params["bn1"]))
    y = jax.lax.conv_general_dilated(y, params["dw"], (1, 1), ((1, 1), (1, 1)),
                                     dimension_numbers=dn, feature_group_count=Cs)
    y = _bn_ref(y, *params["bn2"])
    y = jax.lax.conv_general_dilated(y, params["w3"], (1, 1), "VALID",
                                     dimension_numbers=dn)
    y = jax.nn.relu(_bn_ref(y, *params["bn3"]))
    cat = jnp.concatenate([x1, y], axis=1)
    g = groups
    return cat.reshape(N, g, C // g, H, W).transpose(0, 2, 1, 3, 4).reshape(N, C, H, W)


# --------------------------------- main --------------------------------------
if __name__ == "__main__":
    key = jax.random.PRNGKey(0)
    k_x, k_w1, k_dw, k_w3 = jax.random.split(key, 4)

    N, C, H, W = 2, 8, 16, 16
    Cs = C // 2

    x = jax.random.normal(k_x, (N, C, H, W), dtype=jnp.float32)

    def bn_params(i):
        gamma = 1.0 + 0.1 * jnp.arange(Cs, dtype=jnp.float32) + 0.01 * i
        beta = 0.05 * jnp.arange(Cs, dtype=jnp.float32) - 0.02 * i
        mean = 0.1 * jnp.sin(jnp.arange(Cs, dtype=jnp.float32) + i)
        var = 1.0 + 0.2 * jnp.cos(jnp.arange(Cs, dtype=jnp.float32) + i) ** 2
        return (gamma, beta, mean, var)

    params = {
        "w1": 0.3 * jax.random.normal(k_w1, (Cs, Cs, 1, 1), dtype=jnp.float32),
        "dw": 0.3 * jax.random.normal(k_dw, (Cs, 1, 3, 3), dtype=jnp.float32),
        "w3": 0.3 * jax.random.normal(k_w3, (Cs, Cs, 1, 1), dtype=jnp.float32),
        "bn1": bn_params(1),
        "bn2": bn_params(2),
        "bn3": bn_params(3),
    }

    out = jax.block_until_ready(jax.jit(basic_block_forward)(x, params))
    ref = jax.block_until_ready(basic_block_ref(x, params))

    assert out.shape == (N, C, H, W)
    # Tolerance leaves room for BN weight-folding reassociation and MXU f32
    # pass-ordering differences; structural errors would be O(0.1) or larger.
    assert jnp.allclose(out, ref, rtol=1e-3, atol=1e-3), float(jnp.max(jnp.abs(out - ref)))

    print("KERNEL_OK")
</pallas_src>

<mosaic_0001>
module attributes {stable_mosaic.version = 11 : i64} {
  func.func @_basic_block_kernel(%arg0: i32, %arg1: memref<1x2x4x256xf32, #tpu.memory_space<vmem>>, %arg2: memref<4x4xf32, #tpu.memory_space<vmem>>, %arg3: memref<4x4xf32, #tpu.memory_space<vmem>>, %arg4: memref<9x4x256xf32, #tpu.memory_space<vmem>>, %arg5: memref<4x1xf32, #tpu.memory_space<vmem>>, %arg6: memref<4x1xf32, #tpu.memory_space<vmem>>, %arg7: memref<1x4x512xf32, #tpu.memory_space<vmem>>) attributes {dimension_semantics = [#tpu.dimension_semantics<parallel>], iteration_bounds = array<i64: 2>, scalar_prefetch = 0 : i64, scratch_operands = 0 : i64, tpu.core_type = #tpu.core_type<tc>, window_params = [{transform_indices = @transform_0, window_bounds = array<i64: 1, 2, 4, 256>}, {pipeline_mode = #tpu.pipeline_mode<synchronous>, transform_indices = @transform_1, window_bounds = array<i64: 4, 4>}, {pipeline_mode = #tpu.pipeline_mode<synchronous>, transform_indices = @transform_2, window_bounds = array<i64: 4, 4>}, {pipeline_mode = #tpu.pipeline_mode<synchronous>, transform_indices = @transform_3, window_bounds = array<i64: 9, 4, 256>}, {pipeline_mode = #tpu.pipeline_mode<synchronous>, transform_indices = @transform_4, window_bounds = array<i64: 4, 1>}, {pipeline_mode = #tpu.pipeline_mode<synchronous>, transform_indices = @transform_5, window_bounds = array<i64: 4, 1>}, {transform_indices = @transform_6, window_bounds = array<i64: 1, 4, 512>}]} {
    %c0 = arith.constant 0 : index
    %c0_0 = arith.constant 0 : index
    %c0_1 = arith.constant 0 : index
    %c0_2 = arith.constant 0 : index
    %0 = vector.load %arg1[%c0, %c0_0, %c0_1, %c0_2] : memref<1x2x4x256xf32, #tpu.memory_space<vmem>>, vector<1x1x4x256xf32>
    %1 = vector.shape_cast %0 : vector<1x1x4x256xf32> to vector<4x256xf32>
    %c0_3 = arith.constant 0 : index
    %c1 = arith.constant 1 : index
    %c0_4 = arith.constant 0 : index
    %c0_5 = arith.constant 0 : index
    %2 = vector.load %arg1[%c0_3, %c1, %c0_4, %c0_5] : memref<1x2x4x256xf32, #tpu.memory_space<vmem>>, vector<1x1x4x256xf32>
    %3 = vector.shape_cast %2 : vector<1x1x4x256xf32> to vector<4x256xf32>
    %c0_6 = arith.constant 0 : index
    %c0_7 = arith.constant 0 : index
    %4 = vector.load %arg2[%c0_6, %c0_7] : memref<4x4xf32, #tpu.memory_space<vmem>>, vector<4x4xf32>
    %cst = arith.constant dense<0.000000e+00> : vector<4x256xf32>
    %5 = tpu.matmul %4, %3, %cst {dimension_numbers = #tpu.dot_dimension_numbers<[1], [0], [0], [1], [0, 0, 1, 1], [], []>} : vector<4x4xf32>, vector<4x256xf32>, vector<4x256xf32> -> vector<4x256xf32>
    %c0_8 = arith.constant 0 : index
    %c0_9 = arith.constant 0 : index
    %6 = vector.load %arg5[%c0_8, %c0_9] : memref<4x1xf32, #tpu.memory_space<vmem>>, vector<4x1xf32>
    %7 = vector.broadcast %6 : vector<4x1xf32> to vector<4x256xf32>
    %8 = arith.addf %5, %7 : vector<4x256xf32>
    %cst_10 = arith.constant 0.000000e+00 : f32
    %9 = vector.broadcast %cst_10 : f32 to vector<4x256xf32>
    %10 = arith.maximumf %8, %9 : vector<4x256xf32>
    %c17_i32 = arith.constant 17 : i32
    %11 = tpu.dynamic_rotate %10 by %c17_i32 dim 1 : vector<4x256xf32>, i32 -> vector<4x256xf32>
    %c0_11 = arith.constant 0 : index
    %c0_12 = arith.constant 0 : index
    %c0_13 = arith.constant 0 : index
    %12 = vector.load %arg4[%c0_11, %c0_12, %c0_13] : memref<9x4x256xf32, #tpu.memory_space<vmem>>, vector<1x4x256xf32>
    %13 = vector.shape_cast %12 : vector<1x4x256xf32> to vector<4x256xf32>
    %14 = arith.mulf %11, %13 : vector<4x256xf32>
    %c16_i32 = arith.constant 16 : i32
    %15 = tpu.dynamic_rotate %10 by %c16_i32 dim 1 : vector<4x256xf32>, i32 -> vector<4x256xf32>
    %c1_14 = arith.constant 1 : index
    %c0_15 = arith.constant 0 : index
    %c0_16 = arith.constant 0 : index
    %16 = vector.load %arg4[%c1_14, %c0_15, %c0_16] : memref<9x4x256xf32, #tpu.memory_space<vmem>>, vector<1x4x256xf32>
    %17 = vector.shape_cast %16 : vector<1x4x256xf32> to vector<4x256xf32>
    %18 = arith.mulf %15, %17 : vector<4x256xf32>
    %19 = arith.addf %14, %18 : vector<4x256xf32>
    %c15_i32 = arith.constant 15 : i32
    %20 = tpu.dynamic_rotate %10 by %c15_i32 dim 1 : vector<4x256xf32>, i32 -> vector<4x256xf32>
    %c2 = arith.constant 2 : index
    %c0_17 = arith.constant 0 : index
    %c0_18 = arith.constant 0 : index
    %21 = vector.load %arg4[%c2, %c0_17, %c0_18] : memref<9x4x256xf32, #tpu.memory_space<vmem>>, vector<1x4x256xf32>
    %22 = vector.shape_cast %21 : vector<1x4x256xf32> to vector<4x256xf32>
    %23 = arith.mulf %20, %22 : vector<4x256xf32>
    %24 = arith.addf %19, %23 : vector<4x256xf32>
    %c1_i32 = arith.constant 1 : i32
    %25 = tpu.dynamic_rotate %10 by %c1_i32 dim 1 : vector<4x256xf32>, i32 -> vector<4x256xf32>
    %c3 = arith.constant 3 : index
    %c0_19 = arith.constant 0 : index
    %c0_20 = arith.constant 0 : index
    %26 = vector.load %arg4[%c3, %c0_19, %c0_20] : memref<9x4x256xf32, #tpu.memory_space<vmem>>, vector<1x4x256xf32>
    %27 = vector.shape_cast %26 : vector<1x4x256xf32> to vector<4x256xf32>
    %28 = arith.mulf %25, %27 : vector<4x256xf32>
    %29 = arith.addf %24, %28 : vector<4x256xf32>
    %c4 = arith.constant 4 : index
    %c0_21 = arith.constant 0 : index
    %c0_22 = arith.constant 0 : index
    %30 = vector.load %arg4[%c4, %c0_21, %c0_22] : memref<9x4x256xf32, #tpu.memory_space<vmem>>, vector<1x4x256xf32>
    %31 = vector.shape_cast %30 : vector<1x4x256xf32> to vector<4x256xf32>
    %32 = arith.mulf %10, %31 : vector<4x256xf32>
    %33 = arith.addf %29, %32 : vector<4x256xf32>
    %c255_i32 = arith.constant 255 : i32
    %34 = tpu.dynamic_rotate %10 by %c255_i32 dim 1 : vector<4x256xf32>, i32 -> vector<4x256xf32>
    %c5 = arith.constant 5 : index
    %c0_23 = arith.constant 0 : index
    %c0_24 = arith.constant 0 : index
    %35 = vector.load %arg4[%c5, %c0_23, %c0_24] : memref<9x4x256xf32, #tpu.memory_space<vmem>>, vector<1x4x256xf32>
    %36 = vector.shape_cast %35 : vector<1x4x256xf32> to vector<4x256xf32>
    %37 = arith.mulf %34, %36 : vector<4x256xf32>
    %38 = arith.addf %33, %37 : vector<4x256xf32>
    %c241_i32 = arith.constant 241 : i32
    %39 = tpu.dynamic_rotate %10 by %c241_i32 dim 1 : vector<4x256xf32>, i32 -> vector<4x256xf32>
    %c6 = arith.constant 6 : index
    %c0_25 = arith.constant 0 : index
    %c0_26 = arith.constant 0 : index
    %40 = vector.load %arg4[%c6, %c0_25, %c0_26] : memref<9x4x256xf32, #tpu.memory_space<vmem>>, vector<1x4x256xf32>
    %41 = vector.shape_cast %40 : vector<1x4x256xf32> to vector<4x256xf32>
    %42 = arith.mulf %39, %41 : vector<4x256xf32>
    %43 = arith.addf %38, %42 : vector<4x256xf32>
    %c240_i32 = arith.constant 240 : i32
    %44 = tpu.dynamic_rotate %10 by %c240_i32 dim 1 : vector<4x256xf32>, i32 -> vector<4x256xf32>
    %c7 = arith.constant 7 : index
    %c0_27 = arith.constant 0 : index
    %c0_28 = arith.constant 0 : index
    %45 = vector.load %arg4[%c7, %c0_27, %c0_28] : memref<9x4x256xf32, #tpu.memory_space<vmem>>, vector<1x4x256xf32>
    %46 = vector.shape_cast %45 : vector<1x4x256xf32> to vector<4x256xf32>
    %47 = arith.mulf %44, %46 : vector<4x256xf32>
    %48 = arith.addf %43, %47 : vector<4x256xf32>
    %c239_i32 = arith.constant 239 : i32
    %49 = tpu.dynamic_rotate %10 by %c239_i32 dim 1 : vector<4x256xf32>, i32 -> vector<4x256xf32>
    %c8 = arith.constant 8 : index
    %c0_29 = arith.constant 0 : index
    %c0_30 = arith.constant 0 : index
    %50 = vector.load %arg4[%c8, %c0_29, %c0_30] : memref<9x4x256xf32, #tpu.memory_space<vmem>>, vector<1x4x256xf32>
    %51 = vector.shape_cast %50 : vector<1x4x256xf32> to vector<4x256xf32>
    %52 = arith.mulf %49, %51 : vector<4x256xf32>
    %53 = arith.addf %48, %52 : vector<4x256xf32>
    %c0_31 = arith.constant 0 : index
    %c0_32 = arith.constant 0 : index
    %54 = vector.load %arg3[%c0_31, %c0_32] : memref<4x4xf32, #tpu.memory_space<vmem>>, vector<4x4xf32>
    %cst_33 = arith.constant dense<0.000000e+00> : vector<4x256xf32>
    %55 = tpu.matmul %54, %53, %cst_33 {dimension_numbers = #tpu.dot_dimension_numbers<[1], [0], [0], [1], [0, 0, 1, 1], [], []>} : vector<4x4xf32>, vector<4x256xf32>, vector<4x256xf32> -> vector<4x256xf32>
    %c0_34 = arith.constant 0 : index
    %c0_35 = arith.constant 0 : index
    %56 = vector.load %arg6[%c0_34, %c0_35] : memref<4x1xf32, #tpu.memory_space<vmem>>, vector<4x1xf32>
    %57 = vector.broadcast %56 : vector<4x1xf32> to vector<4x256xf32>
    %58 = arith.addf %55, %57 : vector<4x256xf32>
    %cst_36 = arith.constant 0.000000e+00 : f32
    %59 = vector.broadcast %cst_36 : f32 to vector<4x256xf32>
    %60 = arith.maximumf %58, %59 : vector<4x256xf32>
    %c0_37 = arith.constant 0 : index
    %c0_38 = arith.constant 0 : index
    %c0_39 = arith.constant 0 : index
    %61 = vector.load %arg7[%c0_37, %c0_38, %c0_39] : memref<1x4x512xf32, #tpu.memory_space<vmem>>, vector<1x4x256xf32>
    %62 = vector.shape_cast %61 : vector<1x4x256xf32> to vector<4x256xf32>
    %63 = vector.shape_cast %1 : vector<4x256xf32> to vector<1x4x256xf32>
    tpu.vector_store %arg7[%c0_37, %c0_38, %c0_39], %63 {strides = array<i32>} : memref<1x4x512xf32, #tpu.memory_space<vmem>>, vector<1x4x256xf32>,
    %c0_40 = arith.constant 0 : index
    %c0_41 = arith.constant 0 : index
    %c256 = arith.constant 256 : index
    %64 = vector.load %arg7[%c0_40, %c0_41, %c256] : memref<1x4x512xf32, #tpu.memory_space<vmem>>, vector<1x4x256xf32>
    %65 = vector.shape_cast %64 : vector<1x4x256xf32> to vector<4x256xf32>
    %66 = vector.shape_cast %60 : vector<4x256xf32> to vector<1x4x256xf32>
    tpu.vector_store %arg7[%c0_40, %c0_41, %c256], %66 {strides = array<i32>} : memref<1x4x512xf32, #tpu.memory_space<vmem>>, vector<1x4x256xf32>,
    return
  }
  func.func @transform_0(%arg0: i32) -> (i32, i32, i32, i32) {
    %c0_i32 = arith.constant 0 : i32
    %c0_i32_0 = arith.constant 0 : i32
    %c0_i32_1 = arith.constant 0 : i32
    %c0_i32_2 = arith.constant 0 : i32
    return %arg0, %c0_i32, %c0_i32_0, %c0_i32_1 : i32, i32, i32, i32
  }
  func.func @transform_1(%arg0: i32) -> (i32, i32) {
    %c0_i32 = arith.constant 0 : i32
    %c0_i32_0 = arith.constant 0 : i32
    %c0_i32_1 = arith.constant 0 : i32
    return %c0_i32, %c0_i32_0 : i32, i32
  }
  func.func @transform_2(%arg0: i32) -> (i32, i32) {
    %c0_i32 = arith.constant 0 : i32
    %c0_i32_0 = arith.constant 0 : i32
    %c0_i32_1 = arith.constant 0 : i32
    return %c0_i32, %c0_i32_0 : i32, i32
  }
  func.func @transform_3(%arg0: i32) -> (i32, i32, i32) {
    %c0_i32 = arith.constant 0 : i32
    %c0_i32_0 = arith.constant 0 : i32
    %c0_i32_1 = arith.constant 0 : i32
    %c0_i32_2 = arith.constant 0 : i32
    return %c0_i32, %c0_i32_0, %c0_i32_1 : i32, i32, i32
  }
  func.func @transform_4(%arg0: i32) -> (i32, i32) {
    %c0_i32 = arith.constant 0 : i32
    %c0_i32_0 = arith.constant 0 : i32
    %c0_i32_1 = arith.constant 0 : i32
    return %c0_i32, %c0_i32_0 : i32, i32
  }
  func.func @transform_5(%arg0: i32) -> (i32, i32) {
    %c0_i32 = arith.constant 0 : i32
    %c0_i32_0 = arith.constant 0 : i32
    %c0_i32_1 = arith.constant 0 : i32
    return %c0_i32, %c0_i32_0 : i32, i32
  }
  func.func @transform_6(%arg0: i32) -> (i32, i32, i32) {
    %c0_i32 = arith.constant 0 : i32
    %c0_i32_0 = arith.constant 0 : i32
    %c0_i32_1 = arith.constant 0 : i32
    return %arg0, %c0_i32, %c0_i32_0 : i32, i32, i32
  }
}

</mosaic_0001>

<bundles_post_ra>
// kernel: basic_block_forward.1
= control target key start
LH: loop header
LB: loop body
LE: loop exit
PB: predicated region body
PF: predicated region fallthrough
CT: control target
= control target key end

     0   :  { %s743_s21 = smov 0   ;;  %s849_s0 = inlined_call_operand.vmem [shape: f32[2,2,4,256], index: 0, kind: input, shape index: {}]   ;;  %s850_s1 = inlined_call_operand.vmem [shape: f32[4,4], index: 1, kind: input, shape index: {}]   ;;  %s851_s2 = inlined_call_operand.vmem [shape: f32[4,4], index: 2, kind: input, shape index: {}]   ;;  %s852_s3 = inlined_call_operand.vmem [shape: f32[9,4,256], index: 3, kind: input, shape index: {}]   ;;  %s853_s4 = inlined_call_operand.vmem [shape: f32[4,1], index: 4, kind: input, shape index: {}]   ;;  %s854_s5 = inlined_call_operand.vmem [shape: f32[4,1], index: 5, kind: input, shape index: {}]   ;;  %s855_s6 = inlined_call_operand.vmem [shape: f32[2,4,512], index: 6, kind: output, shape index: {}]  }
   0x1 LB: > { %s632_s22 = sadd.s32 4294967295, %s696_s21   ;;  %p636_p0 = scmp.ge.s32.totalorder %s696_s21, 1  ;;  %s696_s21 = sphi %s743_s21, %s16_s21  }
   0x2   : > { %p212_p1 = scmp.lt.s32.totalorder %s696_s21, 3 }
   0x4   : > { %p213_p2 = pnand %p636_p0, %p212_p1 }
   0x5   : > { %p242_p3 = scmp.lt.s32.totalorder (!%p213_p2), %s632_s22, 1  ;;  %v698_v0 = vmov (!%p213_p2), 0.0   ;;  %v256_v1 = vld [vmem:[%s853_s4] sm:$0xf] (!%p213_p2)  ;;  %v699_v2 = vmov (!%p213_p2), 0   ;;  %vm268_vm0 = vcmask (!%p213_p2), 1043456   ;;  %v350_v17 = vlaneseq (!%p213_p2) }
   0x6   : > { %216 = sbr.rel (%p213_p2) target bundleno = 607 (0x25f), region = 44  ;;  %337 = vmatprep.mubr.f32.mxu0 (!%p213_p2), %v698_v0  ;;  %562 = vmatprep.mubr.f32.mxu1 (!%p213_p2), %v698_v0  ;;  %v255_v6 = vld [vmem:[%s850_s1] sm:$0xf] (!%p213_p2)  ;;  %vm264_vm1 = vcmask (!%p213_p2), 31744   ;;  %s700_s10 = smov (!%p213_p2), 16   ;;  %v645_v21 = vld [vmem:[%s852_s3 + $0x8] sm:$0xff] (!%p213_p2) }
   0x7   : > { %678 = vset.pattern.permute.xlu0 (!%p213_p2), %v699_v2  ;;  %679 = vset.pattern.permute.xlu1 (!%p213_p2), %v699_v2  ;;  %s701_s11 = smov (!%p213_p2), 17   ;;  %s702_s12 = smov (!%p213_p2), 15   ;;  %v483_v14 = vld [vmem:[%s854_s5] sm:$0xf] (!%p213_p2)  ;;  %v792_v19 = vand.u32 (!%p213_p2), 127, %v350_v17  ;;  %v646_v25 = vld [vmem:[%s852_s3 + $0x10] sm:$0xff] (!%p213_p2)  ;;  %v371_v27 = vcombine.high (!%p213_p2), %v645_v21, %v645_v21 }
   0x8   : > { %259 = vperm.xlu0 (!%p213_p2), %678, %v256_v1   ;;  %s703_s13 = smov (!%p213_p2), 1   ;;  %s704_s14 = smov (!%p213_p2), 127   ;;  %v355_v22 = vld [vmem:[%s852_s3] sm:$0xff] (!%p213_p2)  ;;  %v647_v26 = vld [vmem:[%s852_s3 + $0x18] sm:$0xff] (!%p213_p2)  ;;  %v387_v31 = vcombine.high (!%p213_p2), %v646_v25, %v646_v25  ;;  %v649_v44 = vld [vmem:[%s852_s3 + $0x28] sm:$0xff] (!%p213_p2) }
   0x9   : > { %s705_s15 = smov (!%p213_p2), 113   ;;  %s706_s16 = smov (!%p213_p2), 112   ;;  %vm365_vm2 = vcmp.lt.s32.totalorder (!%p213_p2), %v792_v19, 16  ;;  %vm381_vm3 = vcmp.lt.s32.totalorder (!%p213_p2), %v792_v19, 15  ;;  %vm352_vm4 = vcmp.lt.s32.totalorder (!%p213_p2), %v792_v19, 17  ;;  %v357_v28 = vcombine.high (!%p213_p2), %v355_v22, %v355_v22  ;;  %v648_v35 = vld [vmem:[%s852_s3 + $0x20] sm:$0xff] (!%p213_p2) }
   0xa   : > { %s707_s17 = smov (!%p213_p2), 111   ;;  %vm397_vm5 = vcmp.lt.s32.totalorder (!%p213_p2), %v792_v19, 1  ;;  %v403_v33 = vcombine.high (!%p213_p2), %v647_v26, %v647_v26  ;;  %v412_v47 = vcombine.high (!%p213_p2), %v648_v35, %v648_v35  ;;  %vm422_vm6 = vcmp.lt.s32.totalorder (!%p213_p2), %v792_v19, 127  ;;  %v650_v55 = vld [vmem:[%s852_s3 + $0x30] sm:$0xff] (!%p213_p2)  ;;  %v651_v60 = vld [vmem:[%s852_s3 + $0x38] sm:$0xff] (!%p213_p2) }
   0xb   : > { %v428_v54 = vcombine.high (!%p213_p2), %v649_v44, %v649_v44  ;;  %vm438_vm7 = vcmp.lt.s32.totalorder (!%p213_p2), %v792_v19, 113  ;;  %vm454_vm8 = vcmp.lt.s32.totalorder (!%p213_p2), %v792_v19, 112  ;;  %vm470_vm9 = vcmp.lt.s32.totalorder (!%p213_p2), %v792_v19, 111  ;;  %v482_v19 = vld [vmem:[%s851_s2] sm:$0xf] (!%p213_p2) }
   0xd   : > { %s857_s22 = smov (!%p242_p3, %s632_s22), 1 }
   0xe   : > { %s658_s25 = sshll.u32 %s857_s22, 4 }
   0xf   : > { %s246_s28 = scalar_lea.vmem %s849_s0, %s658_s25  ;;  %s760_s7 = scalar_lea.vmem %s855_s6, %s658_s25 }
  0x10   : > { %v252_v3 = vld [vmem:[%s246_s28] sm:$0xff]  ;;  %v641_v4 = vld [vmem:[%s246_s28 + $0x8] sm:$0xff] }
  0x11   : > { %v263_v5 = vcombine.high %v641_v4, %v641_v4  ;;  %571 = vst [vmem:[%s760_s7] sm:$0xff] %v252_v3 }
  0x13   : > { %642 = vmatprep.subr.msk.mxu0 %vm268_vm0, %v263_v5 }
  0x14   : > { %643 = vmatpush1.msk.msra.mxu0 %vm268_vm0, %v641_v4  ;;  %v444_v4 = vcombine.high %v650_v55, %v650_v55 }
  0x15   : > { %644 = vmatmul.mubr.msk.f32.vlgmr.msra.gmra.mrb[0].mxu0 %vm264_vm1, %v255_v6 }
  0x87   : > { %v260_v7 = vpop.permute.xlu0 %259 }
  0xe8   : > { %v339_v8 = vpop.f32.mrb[0].mxu0 }
  0xe9   : > { %v340_v9 = vadd.f32 %v339_v8, %v260_v7  ;;  %v341_v10 = vpop.f32.mrb[1].mxu0  ;;  %v460_v8 = vcombine.high %v651_v60, %v651_v60 }
  0xea   : > { %v342_v12 = vadd.f32 %v341_v10, %v260_v7 }
  0xeb   : > { %v769_v11 = vmax.f32 %v340_v9, 0.0 }
  0xec   : > { %v773_v13 = vmax.f32 %v342_v12, 0.0 }
  0xed   : > { %361 = vrot.lane.b32.xlu1 %v769_v11, %s700_s10  ;;  %346 = vrot.lane.b32.xlu0 %v769_v11, %s701_s11  ;;  %v414_v61 = vmul.f32 %v648_v35, %v769_v11 }
  0xee   : > { %v415_v2 = vmul.f32 %v412_v47, %v773_v13 }
  0xf1   : > { %377 = vrot.lane.b32.xlu1 %v769_v11, %s702_s12  ;;  %363 = vrot.lane.b32.xlu0 %v773_v13, %s700_s10 }
  0xf5   : > { %393 = vrot.lane.b32.xlu1 %v769_v11, %s703_s13  ;;  %379 = vrot.lane.b32.xlu0 %v773_v13, %s702_s12 }
  0xf9   : > { %348 = vrot.lane.b32.xlu1 %v773_v13, %s701_s11  ;;  %395 = vrot.lane.b32.xlu0 %v773_v13, %s703_s13 }
  0xfd   : > { %418 = vrot.lane.b32.xlu1 %v769_v11, %s704_s14  ;;  %420 = vrot.lane.b32.xlu0 %v773_v13, %s704_s14 }
 0x101   : > { %434 = vrot.lane.b32.xlu1 %v769_v11, %s705_s15  ;;  %436 = vrot.lane.b32.xlu0 %v773_v13, %s705_s15 }
 0x105   : > { %450 = vrot.lane.b32.xlu1 %v769_v11, %s706_s16  ;;  %452 = vrot.lane.b32.xlu0 %v773_v13, %s706_s16 }
 0x109   : > { %466 = vrot.lane.b32.xlu1 %v769_v11, %s707_s17  ;;  %468 = vrot.lane.b32.xlu0 %v773_v13, %s707_s17  ;;  %v652_v13 = vld [vmem:[%s852_s3 + $0x40] sm:$0xff] }
 0x10d   : > { %486 = vperm.xlu1 %679, %v483_v14  }
 0x15f   : > { %v362_v15 = vpop.permute.xlu1 %361  ;;  %v347_v16 = vpop.permute.xlu0 %346 }
 0x163   : > { %v378_v18 = vpop.permute.xlu1 %377  ;;  %v364_v20 = vpop.permute.xlu0 %363 }
 0x164   : > { %v366_v29 = vsel %vm365_vm2, %v362_v15, %v364_v20  ;;  %v367_v30 = vsel %vm365_vm2, %v364_v20, %v362_v15 }
 0x165   : > { %v373_v40 = vmul.f32 %v645_v21, %v367_v30  ;;  %v374_v41 = vmul.f32 %v371_v27, %v366_v29 }
 0x167   : > { %v394_v23 = vpop.permute.xlu1 %393  ;;  %v380_v24 = vpop.permute.xlu0 %379 }
 0x168   : > { %v382_v36 = vsel %vm381_vm3, %v378_v18, %v380_v24  ;;  %v383_v37 = vsel %vm381_vm3, %v380_v24, %v378_v18 }
 0x169   : > { %v389_v48 = vmul.f32 %v646_v25, %v383_v37  ;;  %v390_v49 = vmul.f32 %v387_v31, %v382_v36 }
 0x16b   : > { %v349_v32 = vpop.permute.xlu1 %348  ;;  %v396_v34 = vpop.permute.xlu0 %395 }
 0x16c   : > { %v353_v38 = vsel %vm352_vm4, %v347_v16, %v349_v32  ;;  %v354_v39 = vsel %vm352_vm4, %v349_v32, %v347_v16  ;;  %v398_v45 = vsel %vm397_vm5, %v394_v23, %v396_v34  ;;  %v399_v46 = vsel %vm397_vm5, %v396_v34, %v394_v23 }
 0x16d   : > { %v359_v42 = vmul.f32 %v355_v22, %v354_v39  ;;  %v360_v43 = vmul.f32 %v357_v28, %v353_v38  ;;  %v405_v58 = vmul.f32 %v647_v26, %v399_v46  ;;  %v406_v59 = vmul.f32 %v403_v33, %v398_v45 }
 0x16e   : > { %v476_v23 = vcombine.high %v652_v13, %v652_v13 }
 0x16f   : > { %v375_v50 = vadd.f32 %v373_v40, %v359_v42  ;;  %v376_v51 = vadd.f32 %v374_v41, %v360_v43  ;;  %v419_v52 = vpop.permute.xlu1 %418  ;;  %v421_v53 = vpop.permute.xlu0 %420 }
 0x170   : > { %v423_v62 = vsel %vm422_vm6, %v419_v52, %v421_v53  ;;  %v424_v63 = vsel %vm422_vm6, %v421_v53, %v419_v52 }
 0x171   : > { %v391_v56 = vadd.f32 %v389_v48, %v375_v50  ;;  %v392_v57 = vadd.f32 %v390_v49, %v376_v51  ;;  %v430_v11 = vmul.f32 %v649_v44, %v423_v62  ;;  %v431_v12 = vmul.f32 %v428_v54, %v424_v63 }
 0x173   : > { %v407_v0 = vadd.f32 %v405_v58, %v391_v56  ;;  %v408_v1 = vadd.f32 %v406_v59, %v392_v57  ;;  %v435_v3 = vpop.permute.xlu1 %434  ;;  %v437_v5 = vpop.permute.xlu0 %436 }
 0x174   : > { %v439_v6 = vsel %vm438_vm7, %v435_v3, %v437_v5  ;;  %v440_v7 = vsel %vm438_vm7, %v437_v5, %v435_v3 }
 0x175   : > { %v417_v9 = vadd.f32 %v415_v2, %v408_v1  ;;  %v416_v10 = vadd.f32 %v414_v61, %v407_v0  ;;  %v446_v16 = vmul.f32 %v650_v55, %v439_v6  ;;  %v447_v17 = vmul.f32 %v444_v4, %v440_v7 }
 0x177   : > { %v432_v14 = vadd.f32 %v430_v11, %v416_v10  ;;  %v433_v15 = vadd.f32 %v431_v12, %v417_v9  ;;  %v451_v18 = vpop.permute.xlu1 %450  ;;  %v453_v20 = vpop.permute.xlu0 %452 }
 0x178   : > { %v455_v21 = vsel %vm454_vm8, %v451_v18, %v453_v20  ;;  %v456_v22 = vsel %vm454_vm8, %v453_v20, %v451_v18 }
 0x179   : > { %v448_v24 = vadd.f32 %v446_v16, %v432_v14  ;;  %v449_v25 = vadd.f32 %v447_v17, %v433_v15  ;;  %v462_v26 = vmul.f32 %v651_v60, %v455_v21  ;;  %v463_v27 = vmul.f32 %v460_v8, %v456_v22 }
 0x17b   : > { %v467_v28 = vpop.permute.xlu1 %466  ;;  %v469_v29 = vpop.permute.xlu0 %468  ;;  %v464_v32 = vadd.f32 %v462_v26, %v448_v24  ;;  %v465_v35 = vadd.f32 %v463_v27, %v449_v25 }
 0x17c   : > { %v471_v30 = vsel %vm470_vm9, %v467_v28, %v469_v29  ;;  %v472_v31 = vsel %vm470_vm9, %v469_v29, %v467_v28 }
 0x17d   : > { %v478_v33 = vmul.f32 %v652_v13, %v471_v30  ;;  %v479_v34 = vmul.f32 %v476_v23, %v472_v31 }
 0x17f   : > { %v481_v36 = vadd.f32 %v479_v34, %v465_v35  ;;  %v480_v37 = vadd.f32 %v478_v33, %v464_v32 }
 0x181   : > { %653 = vmatprep.subr.msk.mxu1 %vm268_vm0, %v481_v36 }
 0x182   : > { %654 = vmatpush1.msk.msra.mxu1 %vm268_vm0, %v480_v37 }
 0x183   : > { %655 = vmatmul.mubr.msk.f32.vlgmr.msra.gmra.mrb[0].mxu1 %vm264_vm1, %v482_v19 }
 0x18c   : > { %v487_v38 = vpop.permute.xlu1 %486 }
 0x256   : > { %v564_v39 = vpop.f32.mrb[0].mxu1 }
 0x257   : > { %v565_v40 = vadd.f32 %v564_v39, %v487_v38  ;;  %v566_v41 = vpop.f32.mrb[1].mxu1 }
 0x258   : > { %v567_v42 = vadd.f32 %v566_v41, %v487_v38 }
 0x259   : > { %v569_v43 = vmax.f32 %v565_v40, 0.0 }
 0x25a   : > { %v570_v44 = vmax.f32 %v567_v42, 0.0 }
 0x25c   : > { %v574_v45 = vcombine.low %v569_v43, %v570_v44 }
 0x25e   : > { %576 = vst [vmem:[%s760_s7 + $0x8] sm:$0xff] %v574_v45 }
 0x25f PF: > { %s16_s21 = sadd.s32 1, %s696_s21  }
 0x260   : > { %p13_p4 = scmp.ge.s32.totalorder %s16_s21, 4  }
 0x262   :  { %15 = sbr.rel (!%p13_p4) target bundleno = 1 (0x1), region = 83 }

</bundles_post_ra>
